<compile_context>
chip_gen: v7x
topology: tpu7x:2x2x1
jax: 0.10.0
libtpu: 0.0.40
codegen_flags: <defaults>
</compile_context>

<pallas_src>
import math
from functools import partial

import jax
import jax.numpy as jnp
import numpy as np
from jax.experimental import pallas as pl
from jax.experimental.pallas import tpu as pltpu


# ---------------------------------------------------------------------------
# Pallas kernel
# ---------------------------------------------------------------------------
def _etconv_kernel(x_ref, a_ref, r_ref, b_ref, out_ref):
    """Fused equalized-lr transposed-conv forward (lane-dense, scatter-free).

    x_ref  : (N*H,  Cin*W)        input, image-major rows / (channel, width) lanes
    a_ref  : (k, N*Ho, N*H)       block-diagonal 0/1 row-spread matrices, one per kh
    r_ref  : (k, Cin*W, Cout*Wo)  pre-scaled width-tap + channel-mixing weights
    b_ref  : (1, Cout*Wo)         per-output-channel bias broadcast over Wo
    out_ref: (N*Ho, Cout*Wo)      lane-dense output slab (NCHW reshape done outside)
    """
    k = a_ref.shape[0]

    # Bias folded into the accumulator init (single broadcast, outside the loop).
    acc = jnp.broadcast_to(b_ref[...], out_ref.shape).astype(jnp.float32)

    x_mat = x_ref[...]                                   # tiny (8 KiB); LHS of all stage-1 dots
    for kh in range(k):                                  # static unroll, k = 4
        # Stage 1 (MXU): apply width taps + channel mixing for this kh,
        # for BOTH images and ALL output channels at once.  RHS/out are 256-lane.
        t = jnp.dot(x_mat, r_ref[kh],
                    preferred_element_type=jnp.float32)              # (N*H, Cout*Wo)
        # Stage 2 (MXU): spread input rows onto their strided output rows
        # (block-diagonal over the batch -> one M = N*Ho matmul).
        acc = acc + jnp.dot(a_ref[kh], t,
                            preferred_element_type=jnp.float32)      # (N*Ho, Cout*Wo)

    out_ref[...] = acc.astype(out_ref.dtype)              # single unmasked 256-lane store


# ---------------------------------------------------------------------------
# Constant preparation (once per weight update) + jitted apply
# ---------------------------------------------------------------------------
def make_equal_transpose_conv2d(weight, bias, *, stride=1, padding=0, input_shape):
    """Builds the constant operand matrices ONCE and returns a jitted apply(x)."""
    N, Cin, H, W = input_shape
    Cout, Cin_w, k, k2 = weight.shape
    assert Cin == Cin_w and k == k2
    s, p = stride, padding
    Ho = (H - 1) * s - 2 * p + k
    Wo = (W - 1) * s - 2 * p + k
    scale = 1.0 / math.sqrt(Cin * k * k)

    # A blocks: Abig_kh[n*Ho+oh, m*H+ih] = (n==m) & (oh == s*ih + kh - p)
    oh = np.arange(Ho)[:, None]
    ih = np.arange(H)[None, :]
    a_small = np.stack([(oh == s * ih + kh - p) for kh in range(k)], 0).astype(np.float32)
    a_np = np.zeros((k, N * Ho, N * H), np.float32)
    for n in range(N):
        a_np[:, n * Ho:(n + 1) * Ho, n * H:(n + 1) * H] = a_small
    a_blocks = jnp.asarray(a_np)

    # R blocks: R_kh[ci*W+iw, co*Wo+ow] = scale*weight[co,ci,kh,kw] with kw = ow - s*iw + p
    iw = np.arange(W)[:, None]
    ow_i = np.arange(Wo)[None, :]
    kw = ow_i - s * iw + p                                         # (W, Wo)
    valid = ((kw >= 0) & (kw < k)).astype(np.float32)
    kw_c = np.clip(kw, 0, k - 1)
    wg = jnp.take(weight.astype(jnp.float32), jnp.asarray(kw_c), axis=3)   # (Cout,Cin,k,W,Wo)
    wg = wg * jnp.asarray(valid)[None, None, None] * scale
    r_blocks = jnp.transpose(wg, (2, 1, 3, 0, 4)).reshape(k, Cin * W, Cout * Wo)

    if bias is None:
        bias = jnp.zeros((Cout,), jnp.float32)
    bias_row = jnp.repeat(bias.astype(jnp.float32), Wo).reshape(1, Cout * Wo)

    # Materialize constants now so none of this glue runs in the per-call path.
    a_blocks, r_blocks, bias_row = jax.block_until_ready((a_blocks, r_blocks, bias_row))

    kernel_call = pl.pallas_call(
        _etconv_kernel,
        out_shape=jax.ShapeDtypeStruct((N * Ho, Cout * Wo), jnp.float32),
        in_specs=[pl.BlockSpec(memory_space=pltpu.MemorySpace.VMEM) for _ in range(4)],
        out_specs=pl.BlockSpec(memory_space=pltpu.MemorySpace.VMEM),
    )

    @jax.jit
    def _apply(x, a_b, r_b, b_row):
        # Xmat[n*H+ih, ci*W+iw] = x[n,ci,ih,iw]  (wrapper-side layout plumbing)
        xmat = jnp.transpose(x.astype(jnp.float32), (0, 2, 1, 3)).reshape(N * H, Cin * W)
        slab = kernel_call(xmat, a_b, r_b, b_row)                   # (N*Ho, Cout*Wo)
        return slab.reshape(N, Ho, Cout, Wo).transpose(0, 2, 1, 3)  # NCHW

    return lambda x: _apply(x, a_blocks, r_blocks, bias_row)


# ---------------------------------------------------------------------------
# Pure-JAX reference (mirrors PyTorch conv_transpose2d) for validation
# ---------------------------------------------------------------------------
def reference_forward(x, weight, bias, stride, padding):
    Cout, Cin, k, _ = weight.shape
    scale = 1.0 / math.sqrt(Cin * k * k)
    g = (weight * scale)[:, :, ::-1, ::-1]                        # flipped, OIHW
    q = k - 1 - padding
    out = jax.lax.conv_general_dilated(
        x, g, window_strides=(1, 1), padding=[(q, q), (q, q)],
        lhs_dilation=(stride, stride), rhs_dilation=(1, 1),
        dimension_numbers=("NCHW", "OIHW", "NCHW"),
        precision=jax.lax.Precision.HIGHEST)
    if bias is not None:
        out = out + bias[None, :, None, None]
    return out


if __name__ == "__main__":
    # Module config: EqualTransposeConv2d(4, 8, kernel_size=4, stride=2, padding=1)
    N, Cin, Cout, H, W = 2, 4, 8, 16, 16
    kernel_size, stride, padding = 4, 2, 1

    key = jax.random.PRNGKey(0)
    kx, kwt, kb = jax.random.split(key, 3)
    x = jax.random.normal(kx, (N, Cin, H, W), jnp.float32)
    weight = jax.random.normal(kwt, (Cout, Cin, kernel_size, kernel_size), jnp.float32)
    bias = 0.1 * jax.random.normal(kb, (Cout,), jnp.float32)

    # Constant prep hoisted out of the per-call path (built once per weight update).
    conv = make_equal_transpose_conv2d(weight, bias, stride=stride, padding=padding,
                                       input_shape=(N, Cin, H, W))
    out = jax.block_until_ready(conv(x))

    Ho = (H - 1) * stride - 2 * padding + kernel_size
    assert out.shape == (N, Cout, Ho, Ho), out.shape

    ref = reference_forward(x, weight, bias, stride, padding)
    np.testing.assert_allclose(np.asarray(out), np.asarray(ref), rtol=1e-3, atol=1e-3)

    print("KERNEL_OK")
</pallas_src>

<mosaic_0001>
module attributes {stable_mosaic.version = 11 : i64} {
  func.func @_etconv_kernel(%arg0: memref<32x64xf32, #tpu.memory_space<vmem>>, %arg1: memref<4x64x32xf32, #tpu.memory_space<vmem>>, %arg2: memref<4x64x256xf32, #tpu.memory_space<vmem>>, %arg3: memref<1x256xf32, #tpu.memory_space<vmem>>, %arg4: memref<64x256xf32, #tpu.memory_space<vmem>>) attributes {dimension_semantics = [], scalar_prefetch = 0 : i64, scratch_operands = 0 : i64, tpu.core_type = #tpu.core_type<tc>} {
    %c0 = arith.constant 0 : index
    %c0_0 = arith.constant 0 : index
    %0 = vector.load %arg3[%c0, %c0_0] : memref<1x256xf32, #tpu.memory_space<vmem>>, vector<1x256xf32>
    %1 = vector.shape_cast %0 : vector<1x256xf32> to vector<1x256xf32>
    %2 = vector.broadcast %1 : vector<1x256xf32> to vector<64x256xf32>
    %c0_1 = arith.constant 0 : index
    %c0_2 = arith.constant 0 : index
    %3 = vector.load %arg0[%c0_1, %c0_2] : memref<32x64xf32, #tpu.memory_space<vmem>>, vector<32x64xf32>
    %c0_3 = arith.constant 0 : index
    %c0_4 = arith.constant 0 : index
    %c0_5 = arith.constant 0 : index
    %4 = vector.load %arg2[%c0_3, %c0_4, %c0_5] : memref<4x64x256xf32, #tpu.memory_space<vmem>>, vector<1x64x256xf32>
    %5 = vector.shape_cast %4 : vector<1x64x256xf32> to vector<64x256xf32>
    %cst = arith.constant dense<0.000000e+00> : vector<32x256xf32>
    %6 = tpu.matmul %3, %5, %cst {dimension_numbers = #tpu.dot_dimension_numbers<[1], [0], [0], [1], [0, 0, 1, 1], [], []>} : vector<32x64xf32>, vector<64x256xf32>, vector<32x256xf32> -> vector<32x256xf32>
    %c0_6 = arith.constant 0 : index
    %c0_7 = arith.constant 0 : index
    %c0_8 = arith.constant 0 : index
    %7 = vector.load %arg1[%c0_6, %c0_7, %c0_8] : memref<4x64x32xf32, #tpu.memory_space<vmem>>, vector<1x64x32xf32>
    %8 = vector.shape_cast %7 : vector<1x64x32xf32> to vector<64x32xf32>
    %cst_9 = arith.constant dense<0.000000e+00> : vector<64x256xf32>
    %9 = tpu.matmul %8, %6, %cst_9 {dimension_numbers = #tpu.dot_dimension_numbers<[1], [0], [0], [1], [0, 0, 1, 1], [], []>} : vector<64x32xf32>, vector<32x256xf32>, vector<64x256xf32> -> vector<64x256xf32>
    %10 = arith.addf %2, %9 : vector<64x256xf32>
    %c1 = arith.constant 1 : index
    %c0_10 = arith.constant 0 : index
    %c0_11 = arith.constant 0 : index
    %11 = vector.load %arg2[%c1, %c0_10, %c0_11] : memref<4x64x256xf32, #tpu.memory_space<vmem>>, vector<1x64x256xf32>
    %12 = vector.shape_cast %11 : vector<1x64x256xf32> to vector<64x256xf32>
    %cst_12 = arith.constant dense<0.000000e+00> : vector<32x256xf32>
    %13 = tpu.matmul %3, %12, %cst_12 {dimension_numbers = #tpu.dot_dimension_numbers<[1], [0], [0], [1], [0, 0, 1, 1], [], []>} : vector<32x64xf32>, vector<64x256xf32>, vector<32x256xf32> -> vector<32x256xf32>
    %c1_13 = arith.constant 1 : index
    %c0_14 = arith.constant 0 : index
    %c0_15 = arith.constant 0 : index
    %14 = vector.load %arg1[%c1_13, %c0_14, %c0_15] : memref<4x64x32xf32, #tpu.memory_space<vmem>>, vector<1x64x32xf32>
    %15 = vector.shape_cast %14 : vector<1x64x32xf32> to vector<64x32xf32>
    %cst_16 = arith.constant dense<0.000000e+00> : vector<64x256xf32>
    %16 = tpu.matmul %15, %13, %cst_16 {dimension_numbers = #tpu.dot_dimension_numbers<[1], [0], [0], [1], [0, 0, 1, 1], [], []>} : vector<64x32xf32>, vector<32x256xf32>, vector<64x256xf32> -> vector<64x256xf32>
    %17 = arith.addf %10, %16 : vector<64x256xf32>
    %c2 = arith.constant 2 : index
    %c0_17 = arith.constant 0 : index
    %c0_18 = arith.constant 0 : index
    %18 = vector.load %arg2[%c2, %c0_17, %c0_18] : memref<4x64x256xf32, #tpu.memory_space<vmem>>, vector<1x64x256xf32>
    %19 = vector.shape_cast %18 : vector<1x64x256xf32> to vector<64x256xf32>
    %cst_19 = arith.constant dense<0.000000e+00> : vector<32x256xf32>
    %20 = tpu.matmul %3, %19, %cst_19 {dimension_numbers = #tpu.dot_dimension_numbers<[1], [0], [0], [1], [0, 0, 1, 1], [], []>} : vector<32x64xf32>, vector<64x256xf32>, vector<32x256xf32> -> vector<32x256xf32>
    %c2_20 = arith.constant 2 : index
    %c0_21 = arith.constant 0 : index
    %c0_22 = arith.constant 0 : index
    %21 = vector.load %arg1[%c2_20, %c0_21, %c0_22] : memref<4x64x32xf32, #tpu.memory_space<vmem>>, vector<1x64x32xf32>
    %22 = vector.shape_cast %21 : vector<1x64x32xf32> to vector<64x32xf32>
    %cst_23 = arith.constant dense<0.000000e+00> : vector<64x256xf32>
    %23 = tpu.matmul %22, %20, %cst_23 {dimension_numbers = #tpu.dot_dimension_numbers<[1], [0], [0], [1], [0, 0, 1, 1], [], []>} : vector<64x32xf32>, vector<32x256xf32>, vector<64x256xf32> -> vector<64x256xf32>
    %24 = arith.addf %17, %23 : vector<64x256xf32>
    %c3 = arith.constant 3 : index
    %c0_24 = arith.constant 0 : index
    %c0_25 = arith.constant 0 : index
    %25 = vector.load %arg2[%c3, %c0_24, %c0_25] : memref<4x64x256xf32, #tpu.memory_space<vmem>>, vector<1x64x256xf32>
    %26 = vector.shape_cast %25 : vector<1x64x256xf32> to vector<64x256xf32>
    %cst_26 = arith.constant dense<0.000000e+00> : vector<32x256xf32>
    %27 = tpu.matmul %3, %26, %cst_26 {dimension_numbers = #tpu.dot_dimension_numbers<[1], [0], [0], [1], [0, 0, 1, 1], [], []>} : vector<32x64xf32>, vector<64x256xf32>, vector<32x256xf32> -> vector<32x256xf32>
    %c3_27 = arith.constant 3 : index
    %c0_28 = arith.constant 0 : index
    %c0_29 = arith.constant 0 : index
    %28 = vector.load %arg1[%c3_27, %c0_28, %c0_29] : memref<4x64x32xf32, #tpu.memory_space<vmem>>, vector<1x64x32xf32>
    %29 = vector.shape_cast %28 : vector<1x64x32xf32> to vector<64x32xf32>
    %cst_30 = arith.constant dense<0.000000e+00> : vector<64x256xf32>
    %30 = tpu.matmul %29, %27, %cst_30 {dimension_numbers = #tpu.dot_dimension_numbers<[1], [0], [0], [1], [0, 0, 1, 1], [], []>} : vector<64x32xf32>, vector<32x256xf32>, vector<64x256xf32> -> vector<64x256xf32>
    %31 = arith.addf %24, %30 : vector<64x256xf32>
    %c0_31 = arith.constant 0 : index
    %c0_32 = arith.constant 0 : index
    %32 = vector.load %arg4[%c0_31, %c0_32] : memref<64x256xf32, #tpu.memory_space<vmem>>, vector<64x256xf32>
    tpu.vector_store %arg4[%c0_31, %c0_32], %31 {strides = array<i32>} : memref<64x256xf32, #tpu.memory_space<vmem>>, vector<64x256xf32>,
    return
  }
}

</mosaic_0001>

<bundles_post_ra>
// kernel: _apply.1
= control target key start
LH: loop header
LB: loop body
LE: loop exit
PB: predicated region body
PF: predicated region fallthrough
CT: control target
= control target key end

     0   :  { %v1422_v3 = vmov 0.0   ;;  %vm49_vm0 = vcmask 523264   ;;  %vm159_vm1 = vcmask 261120   ;;  %s1939_s2 = inlined_call_operand.vmem [shape: f32[4,64,256], index: 2, kind: input, shape index: {}]   ;;  %s1940_s0 = inlined_call_operand.vmem [shape: f32[32,64], index: 0, kind: input, shape index: {}]   ;;  %s1941_s1 = inlined_call_operand.vmem [shape: f32[4,64,32], index: 1, kind: input, shape index: {}]   ;;  %s1942_s3 = inlined_call_operand.vmem [shape: f32[1,256], index: 3, kind: input, shape index: {}]   ;;  %s1943_s4 = inlined_call_operand.vmem [shape: f32[64,256], index: 4, kind: output, shape index: {}]  }
   0x1   :  { %v34_v0 = vld [vmem:[%s1939_s2 + $0x8] sm:$0xff]  ;;  %v36_v1 = vld [vmem:[%s1939_s2 + $0x18] sm:$0xff]  ;;  %v33_v2 = vld [vmem:[%s1939_s2] sm:$0xff]  ;;  %126 = vmatprep.mubr.f32.mxu0 %v1422_v3  ;;  %248 = vmatprep.mubr.f32.mxu1 %v1422_v3 }
   0x2   :  { %v1257_v4 = vpack.c.bf16 %v36_v1, %v34_v0  ;;  %v35_v5 = vld [vmem:[%s1939_s2 + $0x10] sm:$0xff]  ;;  %v38_v6 = vld [vmem:[%s1939_s2 + $0x28] sm:$0xff]  ;;  %v40_v7 = vld [vmem:[%s1939_s2 + $0x38] sm:$0xff] }
   0x3   :  { %v1259_v8 = vpack.c.bf16 %v35_v5, %v33_v2  ;;  %v1261_v9 = vpack.c.bf16 %v40_v7, %v38_v6  ;;  %v37_v10 = vld [vmem:[%s1939_s2 + $0x20] sm:$0xff]  ;;  %v39_v11 = vld [vmem:[%s1939_s2 + $0x30] sm:$0xff]  ;;  %v42_v12 = vld [vmem:[%s1939_s2 + $0x48] sm:$0xff] }
   0x4   :  { %1258 = vmatprep.subr.bf16.mxu0 %v1257_v4  ;;  %v44_v13 = vld [vmem:[%s1939_s2 + $0x58] sm:$0xff]  ;;  %v1263_v14 = vpack.c.bf16 %v39_v11, %v37_v10  ;;  %v41_v16 = vld [vmem:[%s1939_s2 + $0x40] sm:$0xff]  ;;  %v43_v17 = vld [vmem:[%s1939_s2 + $0x50] sm:$0xff] }
   0x5   :  { %1260 = vmatpush1.bf16.msra.mxu0 %v1259_v8  ;;  %v1265_v15 = vpack.c.bf16 %v44_v13, %v42_v12  ;;  %v46_v18 = vld [vmem:[%s1939_s2 + $0x68] sm:$0xff]  ;;  %v48_v19 = vld [vmem:[%s1939_s2 + $0x78] sm:$0xff]  ;;  %v1267_v20 = vpack.c.bf16 %v43_v17, %v41_v16  ;;  %v45_v22 = vld [vmem:[%s1939_s2 + $0x60] sm:$0xff] }
   0x6   :  { %1262 = vmatprep.subr.bf16.mxu0 %v1261_v9  ;;  %v1269_v21 = vpack.c.bf16 %v48_v19, %v46_v18  ;;  %v47_v23 = vld [vmem:[%s1939_s2 + $0x70] sm:$0xff]  ;;  %v1150_v24 = vld [vmem:[%s1939_s2 + $0x88] sm:$0xff]  ;;  %v1152_v25 = vld [vmem:[%s1939_s2 + $0x98] sm:$0xff] }
   0x7   :  { %v1271_v26 = vpack.c.bf16 %v47_v23, %v45_v22  ;;  %v1281_v27 = vpack.c.bf16 %v1152_v25, %v1150_v24  ;;  %v1149_v28 = vld [vmem:[%s1939_s2 + $0x80] sm:$0xff]  ;;  %v1151_v29 = vld [vmem:[%s1939_s2 + $0x90] sm:$0xff]  ;;  %v1154_v30 = vld [vmem:[%s1939_s2 + $0xa8] sm:$0xff] }
   0x8   :  { %v1156_v31 = vld [vmem:[%s1939_s2 + $0xb8] sm:$0xff]  ;;  %v1519_v32 = vld [vmem:[%s1940_s0] sm:$0xff]  ;;  %v1283_v33 = vpack.c.bf16 %v1151_v29, %v1149_v28  ;;  %v1155_v36 = vld [vmem:[%s1939_s2 + $0xb0] sm:$0xff] }
   0x9   :  { %1264 = vmatpush1.bf16.msra.mxu0 %v1263_v14  ;;  %v1285_v34 = vpack.c.bf16 %v1156_v31, %v1154_v30  ;;  %v1153_v35 = vld [vmem:[%s1939_s2 + $0xa0] sm:$0xff]  ;;  %v1158_v37 = vld [vmem:[%s1939_s2 + $0xc8] sm:$0xff]  ;;  %v1160_v38 = vld [vmem:[%s1939_s2 + $0xd8] sm:$0xff] }
   0xa   :  { %1266 = vmatprep.subr.bf16.mxu0 %v1265_v15  ;;  %v1539_v39 = vld [vmem:[%s1940_s0 + $0x8] sm:$0xff]  ;;  %v1287_v40 = vpack.c.bf16 %v1155_v36, %v1153_v35  ;;  %v1289_v41 = vpack.c.bf16 %v1160_v38, %v1158_v37  ;;  %v1157_v42 = vld [vmem:[%s1939_s2 + $0xc0] sm:$0xff]  ;;  %v1159_v43 = vld [vmem:[%s1939_s2 + $0xd0] sm:$0xff] }
   0xb   :  { %v1162_v44 = vld [vmem:[%s1939_s2 + $0xe8] sm:$0xff]  ;;  %v1164_v45 = vld [vmem:[%s1939_s2 + $0xf8] sm:$0xff]  ;;  %v1559_v46 = vld [vmem:[%s1940_s0 + $0x10] sm:$0xff]  ;;  %v1291_v47 = vpack.c.bf16 %v1159_v43, %v1157_v42 }
   0xc   :  { %v1293_v48 = vpack.c.bf16 %v1164_v45, %v1162_v44  ;;  %v1161_v49 = vld [vmem:[%s1939_s2 + $0xe0] sm:$0xff]  ;;  %v1163_v50 = vld [vmem:[%s1939_s2 + $0xf0] sm:$0xff]  ;;  %v1186_v51 = vld [vmem:[%s1939_s2 + $0x108] sm:$0xff] }
   0xd   :  { %1268 = vmatpush1.bf16.msra.mxu0 %v1267_v20  ;;  %v1188_v52 = vld [vmem:[%s1939_s2 + $0x118] sm:$0xff]  ;;  %v1295_v54 = vpack.c.bf16 %v1163_v50, %v1161_v49  ;;  %v1185_v56 = vld [vmem:[%s1939_s2 + $0x100] sm:$0xff]  ;;  %v1187_v57 = vld [vmem:[%s1939_s2 + $0x110] sm:$0xff] }
   0xe   :  { %1270 = vmatprep.subr.bf16.mxu0 %v1269_v21  ;;  %v1579_v53 = vld [vmem:[%s1940_s0 + $0x18] sm:$0xff]  ;;  %v1305_v55 = vpack.c.bf16 %v1188_v52, %v1186_v51  ;;  %v1190_v58 = vld [vmem:[%s1939_s2 + $0x128] sm:$0xff]  ;;  %v1307_v60 = vpack.c.bf16 %v1187_v57, %v1185_v56  ;;  %v1189_v62 = vld [vmem:[%s1939_s2 + $0x120] sm:$0xff] }
   0xf   :  { %v1192_v59 = vld [vmem:[%s1939_s2 + $0x138] sm:$0xff]  ;;  %v1191_v63 = vld [vmem:[%s1939_s2 + $0x130] sm:$0xff]  ;;  %v1194_v0 = vld [vmem:[%s1939_s2 + $0x148] sm:$0xff] }
  0x10   :  { %v1309_v61 = vpack.c.bf16 %v1192_v59, %v1190_v58  ;;  %v1196_v1 = vld [vmem:[%s1939_s2 + $0x158] sm:$0xff]  ;;  %v1311_v2 = vpack.c.bf16 %v1191_v63, %v1189_v62  ;;  %v1193_v5 = vld [vmem:[%s1939_s2 + $0x140] sm:$0xff]  ;;  %v1195_v6 = vld [vmem:[%s1939_s2 + $0x150] sm:$0xff] }
  0x11   :  { %1272 = vmatpush1.bf16.msra.mxu0 %v1271_v26  ;;  %v1313_v4 = vpack.c.bf16 %v1196_v1, %v1194_v0  ;;  %v1198_v7 = vld [vmem:[%s1939_s2 + $0x168] sm:$0xff]  ;;  %v1200_v8 = vld [vmem:[%s1939_s2 + $0x178] sm:$0xff]  ;;  %v1315_v9 = vpack.c.bf16 %v1195_v6, %v1193_v5  ;;  %v1197_v11 = vld [vmem:[%s1939_s2 + $0x160] sm:$0xff] }
  0x12   :  { %1282 = vmatprep.subr.bf16.mxu0 %v1281_v27  ;;  %v1317_v10 = vpack.c.bf16 %v1200_v8, %v1198_v7  ;;  %v1199_v12 = vld [vmem:[%s1939_s2 + $0x170] sm:$0xff]  ;;  %v1222_v13 = vld [vmem:[%s1939_s2 + $0x188] sm:$0xff]  ;;  %v1224_v14 = vld [vmem:[%s1939_s2 + $0x198] sm:$0xff] }
  0x13   :  { %v1319_v15 = vpack.c.bf16 %v1199_v12, %v1197_v11  ;;  %v1329_v16 = vpack.c.bf16 %v1224_v14, %v1222_v13  ;;  %v1221_v17 = vld [vmem:[%s1939_s2 + $0x180] sm:$0xff]  ;;  %v1223_v18 = vld [vmem:[%s1939_s2 + $0x190] sm:$0xff]  ;;  %v1226_v19 = vld [vmem:[%s1939_s2 + $0x1a8] sm:$0xff] }
  0x14   :  { %1137 = vmatmul.mubr.msk.f32.vlgmr.msra.gmra.mrb[0].mxu0 %vm49_vm0, %v1519_v32  ;;  %v1228_v20 = vld [vmem:[%s1939_s2 + $0x1b8] sm:$0xff]  ;;  %v1331_v21 = vpack.c.bf16 %v1223_v18, %v1221_v17  ;;  %v1225_v23 = vld [vmem:[%s1939_s2 + $0x1a0] sm:$0xff]  ;;  %v1227_v24 = vld [vmem:[%s1939_s2 + $0x1b0] sm:$0xff] }
  0x15   :  { %1284 = vmatpush1.bf16.msra.mxu0 %v1283_v33  ;;  %132 = vmatprep.mubr.f32.mxu0 %v1422_v3  ;;  %v1333_v22 = vpack.c.bf16 %v1228_v20, %v1226_v19  ;;  %v1230_v25 = vld [vmem:[%s1939_s2 + $0x1c8] sm:$0xff]  ;;  %v1232_v26 = vld [vmem:[%s1939_s2 + $0x1d8] sm:$0xff]  ;;  %v1335_v27 = vpack.c.bf16 %v1227_v24, %v1225_v23  ;;  %v1229_v29 = vld [vmem:[%s1939_s2 + $0x1c0] sm:$0xff] }
  0x16   :  { %1286 = vmatprep.subr.bf16.mxu0 %v1285_v34  ;;  %v1337_v28 = vpack.c.bf16 %v1232_v26, %v1230_v25  ;;  %v1231_v30 = vld [vmem:[%s1939_s2 + $0x1d0] sm:$0xff]  ;;  %v1234_v31 = vld [vmem:[%s1939_s2 + $0x1e8] sm:$0xff]  ;;  %v1236_v33 = vld [vmem:[%s1939_s2 + $0x1f8] sm:$0xff] }
  0x17   :  { %v1339_v34 = vpack.c.bf16 %v1231_v30, %v1229_v29  ;;  %v1341_v35 = vpack.c.bf16 %v1236_v33, %v1234_v31  ;;  %v1233_v36 = vld [vmem:[%s1939_s2 + $0x1e0] sm:$0xff]  ;;  %v1235_v37 = vld [vmem:[%s1939_s2 + $0x1f0] sm:$0xff]  ;;  %v152_v56 = vld [vmem:[%s1941_s1 + $0x8] sm:$0xff] }
  0x18   :  { %1138 = vmatmul.mubr.msk.f32.gmra.mrb[2].mxu0 %vm49_vm0, %v1539_v39  ;;  %v1343_v38 = vpack.c.bf16 %v1235_v37, %v1233_v36  ;;  %v151_v52 = vld [vmem:[%s1941_s1] sm:$0xff]  ;;  %v153_v59 = vld [vmem:[%s1941_s1 + $0x10] sm:$0xff]  ;;  %v154_v0 = vld [vmem:[%s1941_s1 + $0x18] sm:$0xff] }
  0x19   :  { %1288 = vmatpush1.bf16.msra.mxu0 %v1287_v40  ;;  %138 = vmatprep.mubr.f32.mxu0 %v1422_v3  ;;  %v156_v7 = vld [vmem:[%s1941_s1 + $0x28] sm:$0xff]  ;;  %v157_v12 = vld [vmem:[%s1941_s1 + $0x30] sm:$0xff]  ;;  %v1169_v20 = vld [vmem:[%s1941_s1 + $0x40] sm:$0xff] }
  0x1a   :  { %1290 = vmatprep.subr.bf16.mxu0 %v1289_v41  ;;  %v1170_v23 = vld [vmem:[%s1941_s1 + $0x48] sm:$0xff]  ;;  %v1172_v31 = vld [vmem:[%s1941_s1 + $0x58] sm:$0xff]  ;;  %v1173_v36 = vld [vmem:[%s1941_s1 + $0x60] sm:$0xff] }
  0x1b   :  { %v1241_v37 = vld [vmem:[%s1941_s1 + $0xc0] sm:$0xff] }
  0x1c   :  { %1139 = vmatmul.mubr.msk.f32.gmra.mrb[4].mxu0 %vm49_vm0, %v1559_v46 }
  0x1d   :  { %1292 = vmatpush1.bf16.msra.mxu0 %v1291_v47  ;;  %144 = vmatprep.mubr.f32.mxu0 %v1422_v3 }
  0x1e   :  { %1294 = vmatprep.subr.bf16.mxu0 %v1293_v48 }
  0x20   :  { %1140 = vmatmul.mubr.msk.f32.gmra.mrb[6].mxu0 %vm49_vm0, %v1579_v53 }
  0x21   :  { %1296 = vmatpush1.bf16.msra.mxu0 %v1295_v54  ;;  %394 = vmatprep.mubr.f32.mxu0 %v1422_v3 }
  0x22   :  { %1306 = vmatprep.subr.bf16.mxu0 %v1305_v55 }
  0x24   :  { %1165 = vmatmul.mubr.msk.f32.vlgmr.msra.gmra.mrb[8].mxu0 %vm49_vm0, %v1519_v32 }
  0x25   :  { %400 = vmatprep.mubr.f32.mxu0 %v1422_v3  ;;  %1308 = vmatpush1.bf16.msra.mxu0 %v1307_v60 }
  0x26   :  { %1310 = vmatprep.subr.bf16.mxu0 %v1309_v61 }
  0x28   :  { %1166 = vmatmul.mubr.msk.f32.gmra.mrb[10].mxu0 %vm49_vm0, %v1539_v39 }
  0x29   :  { %406 = vmatprep.mubr.f32.mxu0 %v1422_v3  ;;  %1312 = vmatpush1.bf16.msra.mxu0 %v1311_v2 }
  0x2a   :  { %1314 = vmatprep.subr.bf16.mxu0 %v1313_v4  ;;  %v155_v4 = vld [vmem:[%s1941_s1 + $0x20] sm:$0xff] }
  0x2c   :  { %1167 = vmatmul.mubr.msk.f32.gmra.mrb[12].mxu0 %vm49_vm0, %v1559_v46 }
  0x2d   :  { %412 = vmatprep.mubr.f32.mxu0 %v1422_v3  ;;  %1316 = vmatpush1.bf16.msra.mxu0 %v1315_v9 }
  0x2e   :  { %1318 = vmatprep.subr.bf16.mxu0 %v1317_v10 }
  0x30   :  { %1168 = vmatmul.mubr.msk.f32.gmra.mrb[14].mxu0 %vm49_vm0, %v1579_v53 }
  0x31   :  { %1320 = vmatpush1.bf16.msra.mxu0 %v1319_v15  ;;  %662 = vmatprep.mubr.f32.mxu0 %v1422_v3  ;;  %v158_v15 = vld [vmem:[%s1941_s1 + $0x38] sm:$0xff] }
  0x32   :  { %1330 = vmatprep.subr.bf16.mxu0 %v1329_v16 }
  0x34   :  { %1201 = vmatmul.mubr.msk.f32.vlgmr.msra.gmra.mrb[16].mxu0 %vm49_vm0, %v1519_v32 }
  0x35   :  { %668 = vmatprep.mubr.f32.mxu0 %v1422_v3  ;;  %1332 = vmatpush1.bf16.msra.mxu0 %v1331_v21 }
  0x36   :  { %1334 = vmatprep.subr.bf16.mxu0 %v1333_v22 }
  0x38   :  { %1202 = vmatmul.mubr.msk.f32.gmra.mrb[18].mxu0 %vm49_vm0, %v1539_v39 }
  0x39   :  { %1336 = vmatpush1.bf16.msra.mxu0 %v1335_v27  ;;  %674 = vmatprep.mubr.f32.mxu0 %v1422_v3 }
  0x3a   :  { %1338 = vmatprep.subr.bf16.mxu0 %v1337_v28  ;;  %v1171_v28 = vld [vmem:[%s1941_s1 + $0x50] sm:$0xff] }
  0x3c   :  { %1203 = vmatmul.mubr.msk.f32.gmra.mrb[20].mxu0 %vm49_vm0, %v1559_v46 }
  0x3d   :  { %1340 = vmatpush1.bf16.msra.mxu0 %v1339_v34  ;;  %680 = vmatprep.mubr.f32.mxu0 %v1422_v3 }
  0x3e   :  { %1342 = vmatprep.subr.bf16.mxu0 %v1341_v35 }
  0x40   :  { %1204 = vmatmul.mubr.msk.f32.gmra.mrb[22].mxu0 %vm49_vm0, %v1579_v53 }
  0x41   :  { %1344 = vmatpush1.bf16.msra.mxu0 %v1343_v38  ;;  %930 = vmatprep.mubr.f32.mxu0 %v1422_v3  ;;  %v1174_v38 = vld [vmem:[%s1941_s1 + $0x68] sm:$0xff] }
  0x44   :  { %1237 = vmatmul.mubr.msk.f32.vlgmr.msra.gmra.mrb[24].mxu0 %vm49_vm0, %v1519_v32 }
  0x45   :  { %936 = vmatprep.mubr.f32.mxu0 %v1422_v3 }
  0x48   :  { %1238 = vmatmul.mubr.msk.f32.gmra.mrb[26].mxu0 %vm49_vm0, %v1539_v39 }
  0x49   :  { %942 = vmatprep.mubr.f32.mxu0 %v1422_v3 }
  0x4c   :  { %1239 = vmatmul.mubr.msk.f32.gmra.mrb[28].mxu0 %vm49_vm0, %v1559_v46 }
  0x4d   :  { %948 = vmatprep.mubr.f32.mxu0 %v1422_v3 }
  0x50   :  { %1240 = vmatmul.mubr.msk.f32.gmra.mrb[30].mxu0 %vm49_vm0, %v1579_v53 }
  0x51   :  { %1052 = vmatprep.mubr.f32.mxu0 %v1422_v3 }
  0xe7   :  { %v128_v40 = vpop.f32.mrb[0].mxu0 }
  0xe8   :  { %v130_v41 = vpop.f32.mrb[1].mxu0 }
  0xeb   :  { %v134_v32 = vpop.f32.mrb[2].mxu0 }
  0xec   :  { %v1275_v42 = vpack.c.bf16 %v134_v32, %v128_v40  ;;  %v136_v43 = vpop.f32.mrb[3].mxu0  ;;  %v1242_v40 = vld [vmem:[%s1941_s1 + $0xc8] sm:$0xff]  ;;  %v1243_v32 = vld [vmem:[%s1941_s1 + $0xd0] sm:$0xff] }
  0xed   :  { %v1273_v44 = vpack.c.bf16 %v136_v43, %v130_v41  ;;  %v1175_v41 = vld [vmem:[%s1941_s1 + $0x70] sm:$0xff]  ;;  %v1244_v43 = vld [vmem:[%s1941_s1 + $0xd8] sm:$0xff] }
  0xef   :  { %v140_v45 = vpop.f32.mrb[4].mxu0  ;;  %1274 = vmatprep.subr.bf16.mxu1 %v1273_v44  ;;  %v1205_v44 = vld [vmem:[%s1941_s1 + $0x80] sm:$0xff] }
  0xf0   :  { %v142_v39 = vpop.f32.mrb[5].mxu0  ;;  %1276 = vmatpush1.bf16.msra.mxu1 %v1275_v42  ;;  %v1176_v42 = vld [vmem:[%s1941_s1 + $0x78] sm:$0xff] }
  0xf3   :  { %v146_v47 = vpop.f32.mrb[6].mxu0 }
  0xf4   :  { %v1279_v48 = vpack.c.bf16 %v146_v47, %v140_v45  ;;  %v148_v46 = vpop.f32.mrb[7].mxu0  ;;  %v1245_v45 = vld [vmem:[%s1941_s1 + $0xe0] sm:$0xff]  ;;  %v1246_v47 = vld [vmem:[%s1941_s1 + $0xe8] sm:$0xff] }
  0xf5   :  { %v1277_v49 = vpack.c.bf16 %v148_v46, %v142_v39  ;;  %v1206_v39 = vld [vmem:[%s1941_s1 + $0x88] sm:$0xff]  ;;  %v1247_v46 = vld [vmem:[%s1941_s1 + $0xf0] sm:$0xff] }
  0xf7   :  { %1278 = vmatprep.subr.bf16.mxu1 %v1277_v49  ;;  %v396_v50 = vpop.f32.mrb[8].mxu0  ;;  %v1208_v49 = vld [vmem:[%s1941_s1 + $0x98] sm:$0xff] }
  0xf8   :  { %1280 = vmatpush1.bf16.msra.mxu1 %v1279_v48  ;;  %v398_v51 = vpop.f32.mrb[9].mxu0  ;;  %v1207_v48 = vld [vmem:[%s1941_s1 + $0x90] sm:$0xff] }
  0xfb   :  { %1141 = vmatmul.mubr.msk.f32.vlgmr.msra.gmra.mrb[0].mxu1 %vm159_vm1, %v151_v52  ;;  %v402_v53 = vpop.f32.mrb[10].mxu0  ;;  %v1211_v52 = vld [vmem:[%s1941_s1 + $0xb0] sm:$0xff] }
  0xfc   :  { %v1299_v54 = vpack.c.bf16 %v402_v53, %v396_v50  ;;  %v404_v55 = vpop.f32.mrb[11].mxu0  ;;  %254 = vmatprep.mubr.f32.mxu1 %v1422_v3  ;;  %v1209_v50 = vld [vmem:[%s1941_s1 + $0xa0] sm:$0xff]  ;;  %v1212_v53 = vld [vmem:[%s1941_s1 + $0xb8] sm:$0xff] }
  0xfd   :  { %v1297_v57 = vpack.c.bf16 %v404_v55, %v398_v51  ;;  %v1210_v51 = vld [vmem:[%s1941_s1 + $0xa8] sm:$0xff] }
  0xff   :  { %1142 = vmatmul.mubr.msk.f32.gmra.mrb[2].mxu1 %vm159_vm1, %v152_v56  ;;  %1298 = vmatprep.subr.bf16.mxu1 %v1297_v57  ;;  %v408_v58 = vpop.f32.mrb[12].mxu0  ;;  %v19_v56 = vlaneseq }
 0x100   :  { %1300 = vmatpush1.bf16.msra.mxu1 %v1299_v54  ;;  %260 = vmatprep.mubr.f32.mxu1 %v1422_v3  ;;  %v410_v60 = vpop.f32.mrb[13].mxu0  ;;  %v1248_v54 = vld [vmem:[%s1941_s1 + $0xf8] sm:$0xff] }
 0x103   :  { %1143 = vmatmul.mubr.msk.f32.gmra.mrb[4].mxu1 %vm159_vm1, %v153_v59  ;;  %v414_v61 = vpop.f32.mrb[14].mxu0  ;;  %v20_v59 = vshrl.u32 %v19_v56, 7 }
 0x104   :  { %v1303_v62 = vpack.c.bf16 %v414_v61, %v408_v58  ;;  %266 = vmatprep.mubr.f32.mxu1 %v1422_v3  ;;  %v416_v63 = vpop.f32.mrb[15].mxu0 }
 0x105   :  { %v1301_v1 = vpack.c.bf16 %v416_v63, %v410_v60 }
 0x107   :  { %1144 = vmatmul.mubr.msk.f32.gmra.mrb[6].mxu1 %vm159_vm1, %v154_v0  ;;  %1302 = vmatprep.subr.bf16.mxu1 %v1301_v1  ;;  %v664_v2 = vpop.f32.mrb[16].mxu0  ;;  %v17_v0 = vld [vmem:[%s1942_s3] sm:$0x3] }
 0x108   :  { %272 = vmatprep.mubr.f32.mxu1 %v1422_v3  ;;  %1304 = vmatpush1.bf16.msra.mxu1 %v1303_v62  ;;  %v666_v5 = vpop.f32.mrb[17].mxu0  ;;  %v21_v62 = vsub.s32 0, %v20_v59 }
 0x10b   :  { %1145 = vmatmul.mubr.msk.f32.gmra.mrb[8].mxu1 %vm159_vm1, %v155_v4  ;;  %v670_v6 = vpop.f32.mrb[18].mxu0 }
 0x10c   :  { %278 = vmatprep.mubr.f32.mxu1 %v1422_v3  ;;  %v1323_v8 = vpack.c.bf16 %v670_v6, %v664_v2  ;;  %v672_v9 = vpop.f32.mrb[19].mxu0  ;;  %v1871_v2 = vrot.slane %v17_v0, %v21_v62 }
 0x10d   :  { %v1321_v10 = vpack.c.bf16 %v672_v9, %v666_v5 }
 0x10f   :  { %1146 = vmatmul.mubr.msk.f32.gmra.mrb[10].mxu1 %vm159_vm1, %v156_v7  ;;  %1322 = vmatprep.subr.bf16.mxu1 %v1321_v10  ;;  %v676_v11 = vpop.f32.mrb[20].mxu0 }
 0x110   :  { %284 = vmatprep.mubr.f32.mxu1 %v1422_v3  ;;  %v678_v13 = vpop.f32.mrb[21].mxu0 }
 0x113   :  { %1147 = vmatmul.mubr.msk.f32.gmra.mrb[12].mxu1 %vm159_vm1, %v157_v12  ;;  %v682_v14 = vpop.f32.mrb[22].mxu0 }
 0x114   :  { %290 = vmatprep.mubr.f32.mxu1 %v1422_v3  ;;  %v1327_v16 = vpack.c.bf16 %v682_v14, %v676_v11  ;;  %v684_v17 = vpop.f32.mrb[23].mxu0 }
 0x115   :  { %v1325_v18 = vpack.c.bf16 %v684_v17, %v678_v13 }
 0x117   :  { %1148 = vmatmul.mubr.msk.f32.gmra.mrb[14].mxu1 %vm159_vm1, %v158_v15  ;;  %v932_v19 = vpop.f32.mrb[24].mxu0 }
 0x118   :  { %516 = vmatprep.mubr.f32.mxu1 %v1422_v3  ;;  %v934_v21 = vpop.f32.mrb[25].mxu0 }
 0x11b   :  { %1177 = vmatmul.mubr.msk.f32.vlgmr.msra.gmra.mrb[0].mxu1 %vm159_vm1, %v1169_v20  ;;  %v938_v22 = vpop.f32.mrb[26].mxu0 }
 0x11c   :  { %1324 = vmatpush1.bf16.msra.mxu1 %v1323_v8  ;;  %522 = vmatprep.mubr.f32.mxu1 %v1422_v3  ;;  %v1347_v24 = vpack.c.bf16 %v938_v22, %v932_v19  ;;  %v940_v25 = vpop.f32.mrb[27].mxu0 }
 0x11d   :  { %1326 = vmatprep.subr.bf16.mxu1 %v1325_v18  ;;  %v1345_v26 = vpack.c.bf16 %v940_v25, %v934_v21 }
 0x11f   :  { %1178 = vmatmul.mubr.msk.f32.gmra.mrb[2].mxu1 %vm159_vm1, %v1170_v23  ;;  %v944_v27 = vpop.f32.mrb[28].mxu0  ;;  %1346 = vmatprep.subr.bf16.mxu0 %v1345_v26 }
 0x120   :  { %528 = vmatprep.mubr.f32.mxu1 %v1422_v3  ;;  %1328 = vmatpush1.bf16.msra.mxu1 %v1327_v16  ;;  %v946_v29 = vpop.f32.mrb[29].mxu0 }
 0x121   :  { %1353 = vmatprep.subr.bf16.mxu1 %v1345_v26  ;;  %1348 = vmatpush1.bf16.msra.mxu0 %v1347_v24 }
 0x123   :  { %1179 = vmatmul.mubr.msk.f32.gmra.mrb[4].mxu1 %vm159_vm1, %v1171_v28  ;;  %v950_v30 = vpop.f32.mrb[30].mxu0 }
 0x124   :  { %534 = vmatprep.mubr.f32.mxu1 %v1422_v3  ;;  %v1351_v33 = vpack.c.bf16 %v950_v30, %v944_v27  ;;  %v952_v34 = vpop.f32.mrb[31].mxu0 }
 0x125   :  { %v1349_v35 = vpack.c.bf16 %v952_v34, %v946_v29 }
 0x127   :  { %1180 = vmatmul.mubr.msk.f32.gmra.mrb[6].mxu1 %vm159_vm1, %v1172_v31  ;;  %1350 = vmatprep.subr.bf16.mxu0 %v1349_v35 }
 0x128   :  { %540 = vmatprep.mubr.f32.mxu1 %v1422_v3  ;;  %1352 = vmatpush1.bf16.msra.mxu0 %v1351_v33 }
 0x12b   :  { %1181 = vmatmul.mubr.msk.f32.gmra.mrb[8].mxu1 %vm159_vm1, %v1173_v36  ;;  %1249 = vmatmul.mubr.msk.f32.vlgmr.msra.gmra.mrb[32].mxu0 %vm159_vm1, %v1241_v37 }
 0x12c   :  { %546 = vmatprep.mubr.f32.mxu1 %v1422_v3  ;;  %1058 = vmatprep.mubr.f32.mxu0 %v1422_v3 }
 0x12f   :  { %1182 = vmatmul.mubr.msk.f32.gmra.mrb[10].mxu1 %vm159_vm1, %v1174_v38  ;;  %1250 = vmatmul.mubr.msk.f32.gmra.mrb[34].mxu0 %vm159_vm1, %v1242_v40 }
 0x130   :  { %552 = vmatprep.mubr.f32.mxu1 %v1422_v3  ;;  %1064 = vmatprep.mubr.f32.mxu0 %v1422_v3 }
 0x133   :  { %1183 = vmatmul.mubr.msk.f32.gmra.mrb[12].mxu1 %vm159_vm1, %v1175_v41  ;;  %1251 = vmatmul.mubr.msk.f32.gmra.mrb[36].mxu0 %vm159_vm1, %v1243_v32 }
 0x134   :  { %558 = vmatprep.mubr.f32.mxu1 %v1422_v3  ;;  %1070 = vmatprep.mubr.f32.mxu0 %v1422_v3 }
 0x137   :  { %1184 = vmatmul.mubr.msk.f32.gmra.mrb[14].mxu1 %vm159_vm1, %v1176_v42  ;;  %1252 = vmatmul.mubr.msk.f32.gmra.mrb[38].mxu0 %vm159_vm1, %v1244_v43 }
 0x138   :  { %784 = vmatprep.mubr.f32.mxu1 %v1422_v3  ;;  %1076 = vmatprep.mubr.f32.mxu0 %v1422_v3 }
 0x13b   :  { %1213 = vmatmul.mubr.msk.f32.vlgmr.msra.gmra.mrb[0].mxu1 %vm159_vm1, %v1205_v44  ;;  %1253 = vmatmul.mubr.msk.f32.gmra.mrb[40].mxu0 %vm159_vm1, %v1245_v45 }
 0x13c   :  { %1355 = vmatpush1.bf16.msra.mxu1 %v1347_v24  ;;  %790 = vmatprep.mubr.f32.mxu1 %v1422_v3 }
 0x13d   :  { %1354 = vmatprep.subr.bf16.mxu1 %v1349_v35  ;;  %1082 = vmatprep.mubr.f32.mxu0 %v1422_v3 }
 0x13f   :  { %1214 = vmatmul.mubr.msk.f32.gmra.mrb[2].mxu1 %vm159_vm1, %v1206_v39  ;;  %1254 = vmatmul.mubr.msk.f32.gmra.mrb[42].mxu0 %vm159_vm1, %v1246_v47 }
 0x140   :  { %1356 = vmatpush1.bf16.msra.mxu1 %v1351_v33  ;;  %796 = vmatprep.mubr.f32.mxu1 %v1422_v3 }
 0x141   :  { %1088 = vmatprep.mubr.f32.mxu0 %v1422_v3 }
 0x143   :  { %1215 = vmatmul.mubr.msk.f32.gmra.mrb[4].mxu1 %vm159_vm1, %v1207_v48  ;;  %1255 = vmatmul.mubr.msk.f32.gmra.mrb[44].mxu0 %vm159_vm1, %v1247_v46 }
 0x144   :  { %802 = vmatprep.mubr.f32.mxu1 %v1422_v3 }
 0x147   :  { %1216 = vmatmul.mubr.msk.f32.gmra.mrb[6].mxu1 %vm159_vm1, %v1208_v49 }
 0x148   :  { %808 = vmatprep.mubr.f32.mxu1 %v1422_v3 }
 0x14b   :  { %1217 = vmatmul.mubr.msk.f32.gmra.mrb[8].mxu1 %vm159_vm1, %v1209_v50 }
 0x14c   :  { %814 = vmatprep.mubr.f32.mxu1 %v1422_v3 }
 0x14f   :  { %1218 = vmatmul.mubr.msk.f32.gmra.mrb[10].mxu1 %vm159_vm1, %v1210_v51 }
 0x150   :  { %820 = vmatprep.mubr.f32.mxu1 %v1422_v3 }
 0x153   :  { %1219 = vmatmul.mubr.msk.f32.gmra.mrb[12].mxu1 %vm159_vm1, %v1211_v52 }
 0x154   :  { %826 = vmatprep.mubr.f32.mxu1 %v1422_v3 }
 0x157   :  { %1220 = vmatmul.mubr.msk.f32.gmra.mrb[14].mxu1 %vm159_vm1, %v1212_v53 }
 0x158   :  { %1094 = vmatprep.mubr.f32.mxu1 %v1422_v3  ;;  %v25_v3 = vsub.s32 1, %v20_v59 }
 0x15a   :  { %v1873_v5 = vrot.slane %v17_v0, %v25_v3 }
 0x15f   :  { %1256 = vmatmul.mubr.msk.f32.vlgmr.msra.gmra.mrb[14].mxu1 %vm159_vm1, %v1248_v54 }
 0x1fe   :  { %v1054_v55 = vpop.f32.mrb[32].mxu0 }
 0x1ff   :  { %v1056_v57 = vpop.f32.mrb[33].mxu0 }
 0x202   :  { %v1060_v58 = vpop.f32.mrb[34].mxu0 }
 0x203   :  { %v1062_v60 = vpop.f32.mrb[35].mxu0 }
 0x206   :  { %v1066_v61 = vpop.f32.mrb[36].mxu0 }
 0x207   :  { %v1068_v63 = vpop.f32.mrb[37].mxu0 }
 0x20a   :  { %v1072_v1 = vpop.f32.mrb[38].mxu0 }
 0x20b   :  { %v1074_v4 = vpop.f32.mrb[39].mxu0 }
 0x20e   :  { %v786_v6 = vpop.f32.mrb[0].mxu1  ;;  %v1078_v7 = vpop.f32.mrb[40].mxu0 }
 0x20f   :  { %v1357_v8 = vadd.f32 %v786_v6, %v1871_v2  ;;  %v788_v9 = vpop.f32.mrb[1].mxu1  ;;  %v1080_v10 = vpop.f32.mrb[41].mxu0 }
 0x210   :  { %v1359_v11 = vadd.f32 %v788_v9, %v1873_v5 }
 0x211   :  { %v1358_v12 = vadd.f32 %v1357_v8, %v1054_v55 }
 0x212   :  { %v1360_v13 = vadd.f32 %v1359_v11, %v1056_v57  ;;  %v792_v14 = vpop.f32.mrb[2].mxu1  ;;  %v1084_v15 = vpop.f32.mrb[42].mxu0 }
 0x213   :  { %1117 = vst [vmem:[%s1943_s4] sm:$0xff] %v1358_v12  ;;  %v1361_v16 = vadd.f32 %v792_v14, %v1871_v2  ;;  %v794_v17 = vpop.f32.mrb[3].mxu1  ;;  %v1086_v18 = vpop.f32.mrb[43].mxu0 }
 0x214   :  { %1118 = vst [vmem:[%s1943_s4 + $0x8] sm:$0xff] %v1360_v13  ;;  %v1363_v19 = vadd.f32 %v794_v17, %v1873_v5 }
 0x215   :  { %v1362_v20 = vadd.f32 %v1361_v16, %v1060_v58 }
 0x216   :  { %v1364_v21 = vadd.f32 %v1363_v19, %v1062_v60  ;;  %v798_v22 = vpop.f32.mrb[4].mxu1  ;;  %v1090_v23 = vpop.f32.mrb[44].mxu0 }
 0x217   :  { %1119 = vst [vmem:[%s1943_s4 + $0x10] sm:$0xff] %v1362_v20  ;;  %v1365_v24 = vadd.f32 %v798_v22, %v1871_v2  ;;  %v800_v25 = vpop.f32.mrb[5].mxu1  ;;  %v1092_v26 = vpop.f32.mrb[45].mxu0 }
 0x218   :  { %1120 = vst [vmem:[%s1943_s4 + $0x18] sm:$0xff] %v1364_v21  ;;  %v1367_v27 = vadd.f32 %v800_v25, %v1873_v5 }
 0x219   :  { %v1366_v28 = vadd.f32 %v1365_v24, %v1066_v61 }
 0x21a   :  { %v1368_v29 = vadd.f32 %v1367_v27, %v1068_v63  ;;  %v804_v30 = vpop.f32.mrb[6].mxu1 }
 0x21b   :  { %1121 = vst [vmem:[%s1943_s4 + $0x20] sm:$0xff] %v1366_v28  ;;  %v1369_v31 = vadd.f32 %v804_v30, %v1871_v2  ;;  %v806_v33 = vpop.f32.mrb[7].mxu1 }
 0x21c   :  { %1122 = vst [vmem:[%s1943_s4 + $0x28] sm:$0xff] %v1368_v29  ;;  %v1371_v34 = vadd.f32 %v806_v33, %v1873_v5 }
 0x21d   :  { %v1370_v35 = vadd.f32 %v1369_v31, %v1072_v1 }
 0x21e   :  { %v1372_v36 = vadd.f32 %v1371_v34, %v1074_v4  ;;  %v810_v37 = vpop.f32.mrb[8].mxu1 }
 0x21f   :  { %1123 = vst [vmem:[%s1943_s4 + $0x30] sm:$0xff] %v1370_v35  ;;  %v1373_v38 = vadd.f32 %v810_v37, %v1871_v2  ;;  %v812_v40 = vpop.f32.mrb[9].mxu1 }
 0x220   :  { %1124 = vst [vmem:[%s1943_s4 + $0x38] sm:$0xff] %v1372_v36  ;;  %v1375_v41 = vadd.f32 %v812_v40, %v1873_v5 }
 0x221   :  { %v1374_v32 = vadd.f32 %v1373_v38, %v1078_v7 }
 0x222   :  { %v1376_v42 = vadd.f32 %v1375_v41, %v1080_v10  ;;  %v816_v43 = vpop.f32.mrb[10].mxu1 }
 0x223   :  { %1125 = vst [vmem:[%s1943_s4 + $0x40] sm:$0xff] %v1374_v32  ;;  %v1377_v44 = vadd.f32 %v816_v43, %v1871_v2  ;;  %v818_v45 = vpop.f32.mrb[11].mxu1 }
 0x224   :  { %1126 = vst [vmem:[%s1943_s4 + $0x48] sm:$0xff] %v1376_v42  ;;  %v1379_v39 = vadd.f32 %v818_v45, %v1873_v5 }
 0x225   :  { %v1378_v47 = vadd.f32 %v1377_v44, %v1084_v15 }
 0x226   :  { %v1380_v48 = vadd.f32 %v1379_v39, %v1086_v18  ;;  %v822_v46 = vpop.f32.mrb[12].mxu1 }
 0x227   :  { %1127 = vst [vmem:[%s1943_s4 + $0x50] sm:$0xff] %v1378_v47  ;;  %v1381_v49 = vadd.f32 %v822_v46, %v1871_v2  ;;  %v824_v50 = vpop.f32.mrb[13].mxu1 }
 0x228   :  { %1128 = vst [vmem:[%s1943_s4 + $0x58] sm:$0xff] %v1380_v48  ;;  %v1383_v51 = vadd.f32 %v824_v50, %v1873_v5 }
 0x229   :  { %v1382_v52 = vadd.f32 %v1381_v49, %v1090_v23 }
 0x22a   :  { %v1384_v53 = vadd.f32 %v1383_v51, %v1092_v26 }
 0x22b   :  { %1129 = vst [vmem:[%s1943_s4 + $0x60] sm:$0xff] %v1382_v52 }
 0x22c   :  { %1130 = vst [vmem:[%s1943_s4 + $0x68] sm:$0xff] %v1384_v53 }
 0x232   :  { %v1096_v54 = vpop.f32.mrb[14].mxu1 }
 0x233   :  { %v1385_v55 = vadd.f32 %v1096_v54, %v1871_v2  ;;  %v1098_v56 = vpop.f32.mrb[15].mxu1 }
 0x234   :  { %v1386_v57 = vadd.f32 %v1098_v56, %v1873_v5 }
 0x235   :  { %1131 = vst [vmem:[%s1943_s4 + $0x70] sm:$0xff] %v1385_v55 }
 0x236   :  { %1132 = vst [vmem:[%s1943_s4 + $0x78] sm:$0xff] %v1386_v57 }

</bundles_post_ra>
